<compile_context>
chip_gen: v7x
topology: tpu7x:2x2x1
jax: 0.10.0
libtpu: 0.0.40
codegen_flags: <defaults>
</compile_context>

<pallas_src>
import functools
import math

import jax
import jax.numpy as jnp
from jax import lax
from jax.experimental import pallas as pl
from jax.experimental.pallas import tpu as pltpu


def find_multiple(n: int, k: int) -> int:
    if n % k == 0:
        return n
    return n + k - n % k


def _pick_tile(dim: int, target: int, align: int) -> int:
    """Largest divisor of `dim` that is <= target and aligned (or the full dim)."""
    target = min(target, dim)
    for cand in range(target, 0, -1):
        if dim % cand == 0 and (cand % align == 0 or cand == dim):
            return cand
    return dim


def _pick_head_group(n_head: int, hd: int, max_slab: int = 512) -> int:
    """Heads processed per attention grid step (prefer a 128-lane-aligned slab)."""
    best = 1
    for g in range(1, n_head + 1):
        if n_head % g == 0 and g * hd <= max_slab and (g * hd) % 128 == 0:
            best = g
    if (best * hd) % 128 != 0:
        for g in range(1, n_head + 1):
            if n_head % g == 0 and g * hd <= max_slab:
                best = g
    return best


def rope_half_tables(seq_len, head_dim, base=10000.0):
    """cos/sin tables of shape (T, head_dim//2) (the full table is [t, t])."""
    inv_freq = 1.0 / (base ** (jnp.arange(0, head_dim, 2, dtype=jnp.float32) / head_dim))
    t = jnp.arange(seq_len, dtype=jnp.float32)
    freqs = jnp.outer(t, inv_freq)
    return jnp.cos(freqs), jnp.sin(freqs)


def rotate_half(x):
    half = x.shape[-1] // 2
    return jnp.concatenate([-x[..., half:], x[..., :half]], axis=-1)


def rope_cos_sin(seq_len, dim, base=10000.0, dtype=jnp.float32):
    c, s = rope_half_tables(seq_len, dim, base)
    return (jnp.concatenate([c, c], axis=-1).astype(dtype),
            jnp.concatenate([s, s], axis=-1).astype(dtype))


# ---------------------------------------------------------------------------
# Fused RMSNorm + QKV projection kernel:  qkv = rms1(x) @ [Wq | Wkv]   (bf16 out)
#   grid = (M tiles [parallel], N tiles [parallel]); K (=C) kept whole so the
#   per-row RMS statistics are exact.
# ---------------------------------------------------------------------------
def _rms_qkv_kernel(x_ref, s_ref, w_ref, o_ref, *, eps):
    x = x_ref[...].astype(jnp.float32)
    ms = jnp.mean(x * x, axis=-1, keepdims=True)
    xn = (x * lax.rsqrt(ms + eps)) * s_ref[...].astype(jnp.float32)
    o_ref[...] = jnp.dot(xn.astype(jnp.bfloat16), w_ref[...],
                         preferred_element_type=jnp.float32).astype(o_ref.dtype)


def rms_qkv_proj_pallas(x2, scale, wqkv, *, eps=1e-5, tm=512, tn=512):
    M, C = x2.shape
    N = wqkv.shape[1]
    tm = _pick_tile(M, tm, 8)
    tn = _pick_tile(N, tn, 128)

    cost = pl.CostEstimate(
        flops=int(2 * M * C * N),
        transcendentals=int(M),
        bytes_accessed=int(M * C * 4 + C * N * 2 + M * N * 2 + C * 4),
    )
    return pl.pallas_call(
        functools.partial(_rms_qkv_kernel, eps=eps),
        out_shape=jax.ShapeDtypeStruct((M, N), jnp.bfloat16),
        grid_spec=pltpu.PrefetchScalarGridSpec(
            num_scalar_prefetch=0,
            grid=(M // tm, N // tn),
            in_specs=[
                pl.BlockSpec((tm, C), lambda m, n: (m, 0)),
                pl.BlockSpec((1, C), lambda m, n: (0, 0)),
                pl.BlockSpec((C, tn), lambda m, n: (0, n)),
            ],
            out_specs=pl.BlockSpec((tm, tn), lambda m, n: (m, n)),
        ),
        compiler_params=pltpu.CompilerParams(
            dimension_semantics=("parallel", "parallel")),
        cost_estimate=cost,
    )(x2, scale, wqkv)


# ---------------------------------------------------------------------------
# Fused RoPE + causal attention kernel.
#   grid = (batch [parallel], head-groups [parallel]); G heads per step.
#   q/k/v are column slabs of the (M, 3C) qkv buffer selected purely by
#   BlockSpec index maps (no head-split transposes in JAX).
#   RoPE applied in-kernel (half-table form), scale folded into q,
#   bf16 QK^T / PV with f32 softmax, approx reciprocal for the denominator.
# TODO(synk): for long sequences on v7x (64 MiB VMEM) switch to flash-style
#             KV tiling with online softmax and skip above-diagonal KV blocks.
# ---------------------------------------------------------------------------
def _attn_kernel(q_ref, k_ref, v_ref, cos_ref, sin_ref, o_ref, *, heads, hd, scale):
    T = q_ref.shape[0]
    half = hd // 2
    cos = cos_ref[...].astype(jnp.float32)          # (T, hd//2)
    sin = sin_ref[...].astype(jnp.float32)

    row = lax.broadcasted_iota(jnp.int32, (T, T), 0)
    col = lax.broadcasted_iota(jnp.int32, (T, T), 1)
    causal = col <= row

    for g in range(heads):                          # static unroll over heads in slab
        base = g * hd
        q1 = q_ref[:, base:base + half].astype(jnp.float32)
        q2 = q_ref[:, base + half:base + hd].astype(jnp.float32)
        k1 = k_ref[:, base:base + half].astype(jnp.float32)
        k2 = k_ref[:, base + half:base + hd].astype(jnp.float32)

        # q*cos + rotate_half(q)*sin, with 1/sqrt(hd) folded into q.
        qe = jnp.concatenate([q1 * cos - q2 * sin, q2 * cos + q1 * sin], axis=-1) * scale
        ke = jnp.concatenate([k1 * cos - k2 * sin, k2 * cos + k1 * sin], axis=-1)
        v = v_ref[:, base:base + hd]

        s = lax.dot_general(qe.astype(jnp.bfloat16), ke.astype(jnp.bfloat16),
                            (((1,), (1,)), ((), ())),
                            preferred_element_type=jnp.float32)      # (T, T) f32
        s = jnp.where(causal, s, -1e30)
        m = jnp.max(s, axis=-1, keepdims=True)
        p = jnp.exp(s - m)
        l = jnp.sum(p, axis=-1, keepdims=True)
        o = jnp.dot(p.astype(jnp.bfloat16), v, preferred_element_type=jnp.float32)
        o = o * pl.reciprocal(l, approx=True)
        o_ref[:, base:base + hd] = o.astype(o_ref.dtype)


def fused_rope_attention_pallas(qkv, cos_h, sin_h, *, B, T, n_head, hd):
    M = B * T
    C = n_head * hd
    G = _pick_head_group(n_head, hd)
    n_groups = n_head // G
    slab = G * hd

    qspec = pl.BlockSpec((T, slab), lambda b, hg: (b, hg))
    kspec = pl.BlockSpec((T, slab), lambda b, hg: (b, n_groups + hg))
    vspec = pl.BlockSpec((T, slab), lambda b, hg: (b, 2 * n_groups + hg))
    cspec = pl.BlockSpec((T, hd // 2), lambda b, hg: (0, 0))

    cost = pl.CostEstimate(
        flops=int(4 * B * n_head * T * T * hd),
        transcendentals=int(B * n_head * T * (T + 1)),
        bytes_accessed=int(4 * M * C * 2 + T * hd * 4),
    )
    return pl.pallas_call(
        functools.partial(_attn_kernel, heads=G, hd=hd, scale=1.0 / math.sqrt(hd)),
        out_shape=jax.ShapeDtypeStruct((M, C), jnp.bfloat16),
        grid_spec=pltpu.PrefetchScalarGridSpec(
            num_scalar_prefetch=0,
            grid=(B, n_groups),
            in_specs=[qspec, kspec, vspec, cspec, cspec],
            out_specs=pl.BlockSpec((T, slab), lambda b, hg: (b, hg)),
        ),
        compiler_params=pltpu.CompilerParams(
            dimension_semantics=("parallel", "parallel")),
        cost_estimate=cost,
    )(qkv, qkv, qkv, cos_h, sin_h)


# ---------------------------------------------------------------------------
# Output projection with fused residual:  out = res + a @ b
#   grid = (M [parallel], N [parallel], K [arbitrary/reduction, last])
# ---------------------------------------------------------------------------
def _matmul_residual_kernel(a_ref, b_ref, r_ref, o_ref, acc_ref):
    @pl.when(pl.program_id(2) == 0)
    def _():
        acc_ref[...] = jnp.zeros_like(acc_ref)

    acc_ref[...] += jnp.dot(a_ref[...], b_ref[...],
                            preferred_element_type=jnp.float32)

    @pl.when(pl.program_id(2) == pl.num_programs(2) - 1)
    def _():
        o_ref[...] = (acc_ref[...] + r_ref[...].astype(jnp.float32)).astype(o_ref.dtype)


def matmul_residual_pallas(a, b, res, *, tm=512, tn=512, tk=512):
    M, K = a.shape
    _, N = b.shape
    out_dtype = res.dtype
    tm = _pick_tile(M, tm, 8)
    tn = _pick_tile(N, tn, 128)
    tk = _pick_tile(K, tk, 128)

    abytes = jnp.dtype(a.dtype).itemsize
    rbytes = jnp.dtype(out_dtype).itemsize
    cost = pl.CostEstimate(
        flops=int(2 * M * K * N),
        transcendentals=0,
        bytes_accessed=int(M * K * abytes + K * N * 2 + 2 * M * N * rbytes),
    )
    return pl.pallas_call(
        _matmul_residual_kernel,
        out_shape=jax.ShapeDtypeStruct((M, N), out_dtype),
        grid_spec=pltpu.PrefetchScalarGridSpec(
            num_scalar_prefetch=0,
            grid=(M // tm, N // tn, K // tk),
            in_specs=[
                pl.BlockSpec((tm, tk), lambda m, n, k: (m, k)),
                pl.BlockSpec((tk, tn), lambda m, n, k: (k, n)),
                pl.BlockSpec((tm, tn), lambda m, n, k: (m, n)),
            ],
            out_specs=pl.BlockSpec((tm, tn), lambda m, n, k: (m, n)),
            scratch_shapes=[pltpu.VMEM((tm, tn), jnp.float32)],
        ),
        compiler_params=pltpu.CompilerParams(
            dimension_semantics=("parallel", "parallel", "arbitrary")),
        cost_estimate=cost,
    )(a, b, res)


# ---------------------------------------------------------------------------
# Fused RMSNorm + SwiGLU MLP + residual kernel:
#   out = x + (silu(rms2(x) @ W1) * (rms2(x) @ W2)) @ W3
#   grid = (M tiles [parallel], H tiles [arbitrary / reduction, last])
#   [W1|W2] pre-fused per hidden tile (one wide MXU pass), bf16 matmuls,
#   f32 VMEM accumulator, residual added in the epilogue.
# ---------------------------------------------------------------------------
def _mlp_kernel(x_ref, s_ref, w12_ref, w3_ref, o_ref, acc_ref, *, eps):
    h = pl.program_id(1)

    @pl.when(h == 0)
    def _():
        acc_ref[...] = jnp.zeros_like(acc_ref)

    x = x_ref[...].astype(jnp.float32)
    ms = jnp.mean(x * x, axis=-1, keepdims=True)
    xn = (x * lax.rsqrt(ms + eps)) * s_ref[...].astype(jnp.float32)

    xw = jnp.dot(xn.astype(jnp.bfloat16), w12_ref[...],
                 preferred_element_type=jnp.float32)
    th = xw.shape[-1] // 2
    g = xw[:, :th]
    u = xw[:, th:]
    gated = (g * jax.nn.sigmoid(g)) * u                     # SiLU(g) * u, f32

    acc_ref[...] += jnp.dot(gated.astype(jnp.bfloat16), w3_ref[...],
                            preferred_element_type=jnp.float32)

    @pl.when(h == pl.num_programs(1) - 1)
    def _():
        o_ref[...] = (acc_ref[...] + x).astype(o_ref.dtype)


def rms_mlp_residual_pallas(x2, scale, w12, w3, *, tile_h, eps=1e-5, tm=512):
    M, C = x2.shape
    H = w3.shape[0]
    out_dtype = x2.dtype
    tm = _pick_tile(M, tm, 8)
    th = tile_h
    assert H % th == 0

    xbytes = jnp.dtype(x2.dtype).itemsize
    cost = pl.CostEstimate(
        flops=int(6 * M * C * H),
        transcendentals=int(M * H + M * (H // th)),
        bytes_accessed=int(M * C * xbytes + C * 2 * H * 2 + H * C * 2
                           + M * C * jnp.dtype(out_dtype).itemsize),
    )
    # double-buffered x / W12 / W3 tiles + resident output + f32 accumulator
    vmem_est = (2 * (tm * C * xbytes + C * 2 * th * 2 + th * C * 2)
                + 2 * tm * C * jnp.dtype(out_dtype).itemsize
                + tm * C * 4)
    vmem_limit = int(min(max(2 * vmem_est, 32 * 1024 * 1024), 48 * 1024 * 1024))

    return pl.pallas_call(
        functools.partial(_mlp_kernel, eps=eps),
        out_shape=jax.ShapeDtypeStruct((M, C), out_dtype),
        grid_spec=pltpu.PrefetchScalarGridSpec(
            num_scalar_prefetch=0,
            grid=(M // tm, H // th),                        # reduction (H) axis last
            in_specs=[
                pl.BlockSpec((tm, C), lambda m, h: (m, 0)),
                pl.BlockSpec((1, C), lambda m, h: (0, 0)),
                pl.BlockSpec((C, 2 * th), lambda m, h: (0, h)),
                pl.BlockSpec((th, C), lambda m, h: (h, 0)),
            ],
            out_specs=pl.BlockSpec((tm, C), lambda m, h: (m, 0)),
            scratch_shapes=[pltpu.VMEM((tm, C), jnp.float32)],
        ),
        compiler_params=pltpu.CompilerParams(
            dimension_semantics=("parallel", "arbitrary"),
            vmem_limit_bytes=vmem_limit,
        ),
        cost_estimate=cost,
    )(x2, scale, w12, w3)


# ---------------------------------------------------------------------------
# Parameter preparation (done once, outside the forward)
# ---------------------------------------------------------------------------
def prepare_block_params(raw, n_head, *, tile_h_target=512):
    C = raw['wq_t'].shape[0]
    H = raw['w1_t'].shape[1]
    th = _pick_tile(H, tile_h_target, 128)
    nblk = H // th
    # Fuse W1/W2 per hidden tile: block h of w12 is [W1_tile_h | W2_tile_h].
    w12 = jnp.concatenate(
        [raw['w1_t'].reshape(C, nblk, th), raw['w2_t'].reshape(C, nblk, th)],
        axis=-1).reshape(C, 2 * H).astype(jnp.bfloat16)
    return dict(
        n_head=n_head,
        mlp_tile_h=th,
        rms1_scale=raw['rms1_scale'].reshape(1, C).astype(jnp.float32),
        rms2_scale=raw['rms2_scale'].reshape(1, C).astype(jnp.float32),
        wqkv=jnp.concatenate([raw['wq_t'], raw['wkv_t']], axis=1).astype(jnp.bfloat16),
        wo=raw['wo_t'].astype(jnp.bfloat16),
        w12=w12,
        w3=raw['w3_t'].astype(jnp.bfloat16),
    )


# ---------------------------------------------------------------------------
# Block forward (is_test=False path)
# ---------------------------------------------------------------------------
def block_forward_pallas(x, params):
    B, T, C = x.shape
    n_head = params['n_head']
    hd = C // n_head
    M = B * T
    x2 = x.reshape(M, C)

    # --- attention branch: x + c_proj(attn(rope(q, k), v)) ---
    qkv = rms_qkv_proj_pallas(x2, params['rms1_scale'], params['wqkv'])     # (M, 3C) bf16
    cos_h, sin_h = rope_half_tables(T, hd)                                  # (T, hd//2)
    y = fused_rope_attention_pallas(qkv, cos_h, sin_h,
                                    B=B, T=T, n_head=n_head, hd=hd)         # (M, C) bf16
    x_attn = matmul_residual_pallas(y, params['wo'], x2)                    # x2 + y @ Wo

    # --- MLP branch: x + c_proj(silu(c_fc1(rms2(x))) * c_fc2(rms2(x))) ---
    out = rms_mlp_residual_pallas(x_attn, params['rms2_scale'],
                                  params['w12'], params['w3'],
                                  tile_h=params['mlp_tile_h'])
    return out.reshape(B, T, C)

    # TODO(synk): is_test=True decode path (Python-side kv_cache / y_cache state)
    #             and rope_scaling variants (linear/dynamic/nope) are not implemented.


# ---------------------------------------------------------------------------
# Pure-JAX reference of the torch Block forward (f32)
# ---------------------------------------------------------------------------
def block_reference(x, params, n_head):
    B, T, C = x.shape
    hd = C // n_head

    def rms(v, scale, eps=1e-5):
        ms = jnp.mean(v.astype(jnp.float32) ** 2, axis=-1, keepdims=True)
        return scale * (v * lax.rsqrt(ms + eps))

    h1 = rms(x, params['rms1_scale'])
    q = h1 @ params['wq_t']
    kv = h1 @ params['wkv_t']
    k, v = kv[..., :C], kv[..., C:]

    def to_heads(t):
        return t.reshape(B, T, n_head, hd).transpose(0, 2, 1, 3)

    qh, kh, vh = to_heads(q), to_heads(k), to_heads(v)
    cos, sin = rope_cos_sin(T, hd, dtype=x.dtype)
    qh = qh * cos + rotate_half(qh) * sin
    kh = kh * cos + rotate_half(kh) * sin

    s = jnp.einsum('bhtd,bhsd->bhts', qh, kh) / math.sqrt(hd)
    mask = jnp.tril(jnp.ones((T, T), dtype=bool))
    s = jnp.where(mask, s, -1e30)
    p = jax.nn.softmax(s, axis=-1)
    y = jnp.einsum('bhts,bhsd->bhtd', p, vh)
    y = y.transpose(0, 2, 1, 3).reshape(B, T, C) @ params['wo_t']
    x = x + y

    h2 = rms(x, params['rms2_scale'])
    g = h2 @ params['w1_t']
    u = h2 @ params['w2_t']
    m = (jax.nn.silu(g) * u) @ params['w3_t']
    return x + m


if __name__ == "__main__":
    # Small config consistent with the module's __init__ math.
    n_embd, n_head = 256, 4                                 # head_dim = 64
    B, T = 2, 8
    hidden_dim = 4 * n_embd                                 # 1024
    n_hidden = find_multiple(int(2 * hidden_dim / 3), 256)  # 682 -> 768

    key = jax.random.PRNGKey(0)
    ks = jax.random.split(key, 9)
    x = jax.random.normal(ks[0], (B, T, n_embd), dtype=jnp.float32)

    def linear_w(k, fan_in, shape):
        bound = 1.0 / math.sqrt(fan_in)
        return jax.random.uniform(k, shape, jnp.float32, -bound, bound)

    # Weights stored transposed vs torch nn.Linear ((in, out) instead of (out, in)).
    raw_params = dict(
        rms1_scale=jax.random.uniform(ks[1], (n_embd,), jnp.float32, 0.9, 1.1),
        rms2_scale=jax.random.uniform(ks[2], (n_embd,), jnp.float32, 0.9, 1.1),
        wq_t=linear_w(ks[3], n_embd, (n_embd, n_embd)),
        wkv_t=linear_w(ks[4], n_embd, (n_embd, 2 * n_embd)),
        wo_t=linear_w(ks[5], n_embd, (n_embd, n_embd)),
        w1_t=linear_w(ks[6], n_embd, (n_embd, n_hidden)),
        w2_t=linear_w(ks[7], n_embd, (n_embd, n_hidden)),
        w3_t=linear_w(ks[8], n_hidden, (n_hidden, n_embd)),
    )
    params = prepare_block_params(raw_params, n_head)

    y = block_forward_pallas(x, params)
    y = jax.block_until_ready(y)

    y_ref = block_reference(x, raw_params, n_head)
    assert y.shape == (B, T, n_embd)
    max_err = float(jnp.max(jnp.abs(y - y_ref)))
    # bf16 matmuls throughout the block loosen tolerance vs the f32 reference.
    assert jnp.allclose(y, y_ref, atol=5e-2, rtol=5e-2), \
        f"mismatch vs reference (max abs err {max_err})"

    print("KERNEL_OK")
</pallas_src>

<mosaic_0001>
module attributes {stable_mosaic.version = 11 : i64} {
  func.func @_rms_qkv_kernel(%arg0: i32, %arg1: i32, %arg2: memref<16x256xf32, #tpu.memory_space<vmem>>, %arg3: memref<1x256xf32, #tpu.memory_space<vmem>>, %arg4: memref<256x384xbf16, #tpu.memory_space<vmem>>, %arg5: memref<16x384xbf16, #tpu.memory_space<vmem>>) attributes {dimension_semantics = [#tpu.dimension_semantics<parallel>, #tpu.dimension_semantics<parallel>], iteration_bounds = array<i64: 1, 2>, scalar_prefetch = 0 : i64, scratch_operands = 0 : i64, tpu.core_type = #tpu.core_type<tc>, window_params = [{transform_indices = @transform_0, window_bounds = array<i64: 16, 256>}, {pipeline_mode = #tpu.pipeline_mode<synchronous>, transform_indices = @transform_1, window_bounds = array<i64: 1, 256>}, {transform_indices = @transform_2, window_bounds = array<i64: 256, 384>}, {transform_indices = @transform_3, window_bounds = array<i64: 16, 384>}]} {
    %c0 = arith.constant 0 : index
    %c0_0 = arith.constant 0 : index
    %0 = vector.load %arg2[%c0, %c0_0] : memref<16x256xf32, #tpu.memory_space<vmem>>, vector<16x256xf32>
    %1 = arith.mulf %0, %0 : vector<16x256xf32>
    %cst = arith.constant dense<0.000000e+00> : vector<16xf32>
    %2 = vector.multi_reduction <add>, %1, %cst [1] : vector<16x256xf32> to vector<16xf32>
    %3 = vector.shape_cast %2 : vector<16xf32> to vector<16x1xf32>
    %cst_1 = arith.constant 2.560000e+02 : f32
    %4 = vector.broadcast %cst_1 : f32 to vector<16x1xf32>
    %5 = arith.divf %3, %4 : vector<16x1xf32>
    %cst_2 = arith.constant 9.99999974E-6 : f32
    %6 = vector.broadcast %cst_2 : f32 to vector<16x1xf32>
    %7 = arith.addf %5, %6 : vector<16x1xf32>
    %8 = math.rsqrt %7 : vector<16x1xf32>
    %9 = vector.broadcast %8 : vector<16x1xf32> to vector<16x256xf32>
    %10 = arith.mulf %0, %9 : vector<16x256xf32>
    %c0_3 = arith.constant 0 : index
    %c0_4 = arith.constant 0 : index
    %11 = vector.load %arg3[%c0_3, %c0_4] : memref<1x256xf32, #tpu.memory_space<vmem>>, vector<1x256xf32>
    %12 = vector.broadcast %11 : vector<1x256xf32> to vector<16x256xf32>
    %13 = arith.mulf %10, %12 : vector<16x256xf32>
    %14 = arith.truncf %13 : vector<16x256xf32> to vector<16x256xbf16>
    %c0_5 = arith.constant 0 : index
    %c0_6 = arith.constant 0 : index
    %15 = vector.load %arg4[%c0_5, %c0_6] : memref<256x384xbf16, #tpu.memory_space<vmem>>, vector<256x384xbf16>
    %cst_7 = arith.constant dense<0.000000e+00> : vector<16x384xf32>
    %16 = tpu.matmul %14, %15, %cst_7 {dimension_numbers = #tpu.dot_dimension_numbers<[1], [0], [0], [1], [0, 0, 1, 1], [], []>} : vector<16x256xbf16>, vector<256x384xbf16>, vector<16x384xf32> -> vector<16x384xf32>
    %17 = arith.truncf %16 : vector<16x384xf32> to vector<16x384xbf16>
    %c0_8 = arith.constant 0 : index
    %c0_9 = arith.constant 0 : index
    %18 = vector.load %arg5[%c0_8, %c0_9] : memref<16x384xbf16, #tpu.memory_space<vmem>>, vector<16x384xbf16>
    tpu.vector_store %arg5[%c0_8, %c0_9], %17 {strides = array<i32>} : memref<16x384xbf16, #tpu.memory_space<vmem>>, vector<16x384xbf16>,
    return
  }
  func.func @transform_0(%arg0: i32, %arg1: i32) -> (i32, i32) {
    %c0_i32 = arith.constant 0 : i32
    %c0_i32_0 = arith.constant 0 : i32
    return %arg0, %c0_i32 : i32, i32
  }
  func.func @transform_1(%arg0: i32, %arg1: i32) -> (i32, i32) {
    %c0_i32 = arith.constant 0 : i32
    %c0_i32_0 = arith.constant 0 : i32
    %c0_i32_1 = arith.constant 0 : i32
    return %c0_i32, %c0_i32_0 : i32, i32
  }
  func.func @transform_2(%arg0: i32, %arg1: i32) -> (i32, i32) {
    %c0_i32 = arith.constant 0 : i32
    %c0_i32_0 = arith.constant 0 : i32
    return %c0_i32, %arg1 : i32, i32
  }
  func.func @transform_3(%arg0: i32, %arg1: i32) -> (i32, i32) {
    %c0_i32 = arith.constant 0 : i32
    return %arg0, %arg1 : i32, i32
  }
}

</mosaic_0001>

<bundles_post_ra>
// kernel: tpu_custom_call.1
= control target key start
LH: loop header
LB: loop body
LE: loop exit
PB: predicated region body
PF: predicated region fallthrough
CT: control target
= control target key end

     0   :  { %8 = vsyncpa [#allocation3], 0  ;;  %s1540_s0 = inlined_call_operand.hbm [shape: f32[16,256], index: 0, kind: input, shape index: {}]   ;;  %s1541_s1 = inlined_call_operand.vmem [shape: f32[1,256], index: 1, kind: input, shape index: {}]   ;;  %s1542_s2 = inlined_call_operand.hbm [shape: bf16[256,768], index: 2, kind: input, shape index: {}]   ;;  %s1543_s3 = inlined_call_operand.hbm [shape: bf16[16,768], index: 3, kind: output, shape index: {}]  }
   0x1   :  { %9 = vsyncpa [#allocation6], 0 }
   0x2   :  { %11 = vsyncpa [#allocation6 + $0x1], 0 }
   0x3   :  { %12 = vsyncpa [#allocation4], 0 }
   0x4   :  { %14 = vsyncpa [#allocation4 + $0x1], 0  ;;  %s1238_s12 = smov 0   ;;  %s1240_s13 = smov 0  }
   0x5   :  { %s1242_s14 = smov 0   ;;  %s1244_s15 = smov 0  }
   0x6   :  { %s1246_s16 = smov 0   ;;  %s1248_s17 = smov 0  }
   0x7 LB: > { %s818_s18 = sadd.s32 4294967295, %s1205_s17   ;;  %s819_s19 = sadd.s32 4294967294, %s1205_s17   ;;  %s1205_s17 = sphi %s1248_s17, %s20_s17   ;;  %s1201_s16 = sphi %s1246_s16, %s1572_s16   ;;  %s1197_s15 = sphi %s1244_s15, %s1571_s15   ;;  %s1193_s14 = sphi %s1242_s14, %s1570_s14   ;;  %s1189_s13 = sphi %s1240_s13, %s1569_s13   ;;  %s1185_s12 = sphi %s1238_s12, %s1568_s12  }
   0x8   : > { %p93_p0 = scmp.ne.s32.totalorder %s1193_s14, %s1189_s13  ;;  %p94_p1 = scmp.eq.s32.totalorder %s1205_s17, 0 }
   0x9   : > { %p99_p2 = scmp.ne.s32.totalorder %s1189_s13, %s1185_s12  ;;  %p1276_p3 = scmp.eq.s32.totalorder %s818_s18, 0 }
   0xa   : > { %p125_p4 = scmp.eq.s32.totalorder %s818_s18, 1  ;;  %p1280_p5 = por %p94_p1, %p93_p0 }
   0xb   : > { %s1550_s21 = scalar_select %p1276_p3, 1, 0 }
   0xc   : > { %p131_p6 = scmp.eq.s32.totalorder %s819_s19, 1  ;;  %p1286_p7 = por %p1276_p3, %p99_p2 }
   0xd   : > { %p1290_p8 = por %p125_p4, %p93_p0  ;;  %p820_p10 = scmp.ge.s32.totalorder %s1205_s17, 1 }
   0xe   : > { %s1552_s23 = scalar_select %p1286_p7, 1, 0 }
   0xf   : > { %s1553_s24 = scalar_select %p1290_p8, 1, 0 }
  0x10   : > { %p1294_p9 = por %p131_p6, %p99_p2  ;;  %p138_p11 = scmp.lt.s32.totalorder %s1205_s17, 3 }
  0x11   : > { %s1207_s27 = smov [#allocation2]   ;;  %p933_p1 = scmp.lt.s32.totalorder %s1205_s17, 2 }
  0x12   : > { %s1554_s25 = scalar_select %p1294_p9, 1, 0 }
  0x13   : > { %p1300_p12 = pnand %p820_p10, %p138_p11  ;;  %s154_s28 = sshll.u32 %s1207_s27, 4  ;;  %s1304_s28 = int_to_ptr.vmem [resolvable:$true] %s154_s28 }
  0x14   : > { %p1318_p4 = pnand %p933_p1, %p1280_p5  ;;  %s29_s4 = sadd.s32 1, %s1201_s16 }
  0x15   : > { %s1555_s26 = scalar_select %p1300_p12, 1, 0 }
  0x16   : > { %p920_p13 = pneg %p1300_p12  ;;  %p1323_p6 = scmp.ge.s32.totalorder %s29_s4, 2 }
  0x17   : > { %s1557_s30 = scalar_select %p1318_p4, 1, 0 }
  0x18   : > { %p1312_p2 = pnand %p920_p13, %p1276_p3  ;;  %s1061_s8 = scalar_lea.hbm %s1540_s0, 512 }
  0x19   : > { %s1558_s5 = scalar_select %p1323_p6, 1, 0 }
  0x1a   : > { %p1062_p10 = scmp.ne.s32.totalorder %s1540_s0, %s1061_s8  ;;  %p1063_p11 = pneg %p1312_p2 }
  0x1b   : > { %p1068_p1 = scmp.lt.u32.totalorder %s1061_s8, %s1540_s0 }
  0x1c   : > { %p1064_p13 = pnand %p1063_p11, %p1062_p10 }
  0x1e   : > { %p1065_p5 = pneg %p1064_p13 }
  0x20   : > { %p1070_p0 = pnand %p1068_p1, %p1065_p5 }
  0x22   : > { %1073 = shalt.err (!%p1070_p0)
}
  0x23   : > { %s1074_s19 = scalar_lea.vmem %s1304_s28, 512  ;;  %p1082_p3 = scmp.lt.s32.totalorder %s1304_s28, %s1304_s28 }
  0x24   : > { %p1075_p9 = scmp.ne.s32.totalorder %s1304_s28, %s1074_s19  ;;  %p1083_p12 = scmp.lt.s32.totalorder %s1074_s19, %s1074_s19 }
  0x26   : > { %p1077_p8 = pnand %p1075_p9, %p1063_p11  ;;  %p1084_p4 = por %p1083_p12, %p1082_p3 }
  0x28   : > { %p1078_p7 = pneg %p1077_p8 }
  0x2a   : > { %p1085_p6 = pnand %p1084_p4, %p1078_p7 }
  0x2c   : > { %1088 = shalt.err (!%p1085_p6)
}
  0x2d   : > { %s1208_s22 = smov 256   ;;  %s1209_s27 = smov 16  }
  0x2e   : > { %923 = dma.hbm_to_vmem [thread:$0]  (!%p1312_p2), %s1540_s0, 512, %s1304_s28, [#allocation3], %s1208_s22, %s1208_s22, %s1209_s27  }
  0x2f   : > { %s171_s8 = sand.u32 1, %s1193_s14   ;;  %p1559_p3 = scmp.ne.s32.totalorder %s1558_s5, 0 }
  0x30   : > { %s909_s9 = smul.u32 384, %s171_s8  ;;  %s1560_s22 = sadd.s32 1, %s1193_s14 }
  0x31   : > { %s1574_s4 = smov (%p1559_p3, %s29_s4), 0  ;;  %s881_s11 = smul.u32 192, %s1201_s16 }
  0x32   : > { %s83_s10 = ssub.s32 %s1201_s16, %s1574_s4  ;;  %s175_s28 = scalar_lea.vmem [#allocation5], %s909_s9 }
  0x33   : > { %p84_p7 = scmp.eq.s32.totalorder %s83_s10, 0  ;;  %s1359_s20 = scalar_lea.hbm %s1542_s2, %s881_s11 }
  0x34   : > { %s182_s29 = sshll.u32 %s175_s28, 4  ;;  %s1368_s27 = scalar_lea.sflag [#allocation6], %s171_s8  ;;  %s1366_s29 = int_to_ptr.vmem [resolvable:$true] %s182_s29 }
  0x35   : > { %s1364_s5 = scalar_select %p84_p7, %s1193_s14, %s1560_s22  }
  0x36   : > { %s1089_s6 = scalar_lea.hbm %s1359_s20, 6144  ;;  %p1561_p9 = scmp.ne.s32.totalorder %s1557_s30, 0 }
  0x37   : > { %p1090_p8 = scmp.ne.s32.totalorder %s1359_s20, %s1089_s6  ;;  %s1094_s9 = scalar_lea.hbm %s1542_s2, 12288 }
  0x38   : > { %p1091_p12 = pneg %p1561_p9  ;;  %p1095_p4 = scmp.lt.u32.totalorder %s1359_s20, %s1542_s2 }
  0x39   : > { %p1096_p6 = scmp.lt.u32.totalorder %s1094_s9, %s1089_s6  ;;  %p1098_p11 = scmp.lt.u32.totalorder %s1089_s6, %s1359_s20 }
  0x3a   : > { %p1092_p0 = pnand %p1091_p12, %p1090_p8 }
  0x3b   : > { %p1097_p10 = por %p1096_p6, %p1095_p4 }
  0x3c   : > { %p1093_p2 = pneg %p1092_p0 }
  0x3d   : > { %p1099_p13 = por %p1098_p11, %p1097_p10 }
  0x3f   : > { %p1100_p5 = pnand %p1099_p13, %p1093_p2 }
  0x41   : > { %1103 = shalt.err (!%p1100_p5)
}
  0x42   : > { %s1104_s8 = scalar_lea.vmem %s1366_s29, 6144  ;;  %s1210_s19 = smov [#allocation5]  }
  0x43   : > { %p1105_p1 = scmp.ne.s32.totalorder %s1366_s29, %s1104_s8  ;;  %s1109_s28 = sshll.u32 %s1210_s19, 4  ;;  %s1110_s28 = int_to_ptr.vmem [resolvable:$false] %s1109_s28 }
  0x44   : > { %s1111_s22 = scalar_lea.vmem %s1110_s28, 12288  ;;  %p1112_p8 = scmp.lt.s32.totalorder %s1366_s29, %s1110_s28 }
  0x45   : > { %p1107_p3 = pnand %p1105_p1, %p1091_p12  ;;  %p1113_p0 = scmp.lt.s32.totalorder %s1111_s22, %s1104_s8 }
  0x47   : > { %p1108_p7 = pneg %p1107_p3  ;;  %p1114_p4 = por %p1113_p0, %p1112_p8 }
  0x49   : > { %p1115_p6 = pnand %p1114_p4, %p1108_p7 }
  0x4b   : > { %1118 = shalt.err (!%p1115_p6)
}
  0x4c   : > { %s1211_s6 = smov 384   ;;  %s1212_s7 = smov 192  }
  0x4d   : > { %s1213_s10 = smov 12   ;;  %p1562_p12 = scmp.ne.s32.totalorder %s1555_s26, 0 }
  0x4e   : > { %927 = dma.hbm_to_vmem [thread:$0]  (!%p1561_p9), %s1359_s20, 6144, %s1366_s29, %s1368_s27, %s1211_s6, %s1212_s7, %s1213_s10  }
  0x4f   : > { %194 = sbr.rel (%p1562_p12) target bundleno = 500 (0x1f4), region = 32  ;;  %p1563_p2 = scmp.ne.s32.totalorder (!%p1562_p12), %s1550_s21, 0 }
  0x56   : > { %1172 = dma.done.wait (%p1563_p2), [#allocation3], 512  }
  0x57   : > { %1174 = vsyncadd (%p1563_p2), [#allocation3], 4294966784  ;;  %s1403_s9 = sand.u32 1, %s1189_s13   ;;  %p1564_p9 = scmp.ne.s32.totalorder %s1552_s23, 0 }
  0x58   : > { %s910_s11 = smul.u32 384, %s1403_s9  ;;  %s201_s18 = scalar_lea.sflag [#allocation6], %s1403_s9 }
  0x5a   : > { %s1407_s8 = scalar_lea.vmem [#allocation5], %s910_s11 }
  0x5b   : > { %1176 = dma.done.wait (%p1564_p9), %s201_s18, 6144  }
  0x5c   : > { %1178 = vsyncadd (%p1564_p9), %s201_s18, 4294961152  ;;  %v1413_v0 = vld [vmem:[#allocation2] sm:$0xff]  ;;  %v1415_v1 = vld [vmem:[#allocation2 + $0x8] sm:$0xff]  ;;  %v259_v63 = vlaneseq  ;;  %s911_s23 = smul.u32 24, %s1403_s9  ;;  %s704_s28 = scalar_lea.sflag [#allocation4], %s1403_s9 }
  0x5d   : > { %v1417_v2 = vld [vmem:[#allocation2 + $0x10] sm:$0xff]  ;;  %v236_v3 = vmul.f32 %v1413_v0, %v1413_v0  ;;  %v237_v4 = vmul.f32 %v1415_v1, %v1415_v1  ;;  %v1423_v5 = vld [vmem:[#allocation2 + $0x18] sm:$0xff]  ;;  %v995_v9 = vld [vmem:[%s1407_s8] ss:$12 sps:$4 sm:$0xff]   ;;  %s886_s29 = smul.u32 192, %s1197_s15  ;;  %p1565_p11 = scmp.ne.s32.totalorder %s1553_s24, 0 }
  0x5e   : > { %v238_v6 = vmul.f32 %v1417_v2, %v1417_v2  ;;  %v239_v7 = vmul.f32 %v1423_v5, %v1423_v5  ;;  %v993_v8 = vld [vmem:[%s1407_s8 + $0x4] ss:$12 sps:$4 sm:$0xff]   ;;  %v996_v11 = vld [vmem:[%s1407_s8 + $0x1c] ss:$12 sps:$4 sm:$0xff]   ;;  %v999_v14 = vld [vmem:[%s1407_s8 + $0x34] ss:$12 sps:$4 sm:$0xff]  }
  0x5f   : > { %v240_v10 = vadd.f32 %v237_v4, %v236_v3  ;;  %595 = vmatprep.subr.bf16.mxu0 %v993_v8  ;;  %v998_v13 = vld [vmem:[%s1407_s8 + $0x18] ss:$12 sps:$4 sm:$0xff]   ;;  %v1001_v15 = vld [vmem:[%s1407_s8 + $0x30] ss:$12 sps:$4 sm:$0xff]   ;;  %v1004_v17 = vld [vmem:[%s1407_s8 + $0x48] ss:$12 sps:$4 sm:$0xff]   ;;  %s1491_s15 = scalar_lea.hbm %s1543_s3, %s886_s29 }
  0x60   : > { %v243_v12 = vadd.f32 %v239_v7, %v238_v6  ;;  %596 = vmatpush1.bf16.msra.mxu0 %v995_v9  ;;  %v1002_v16 = vld [vmem:[%s1407_s8 + $0x4c] ss:$12 sps:$4 sm:$0xff]   ;;  %v1019_v18 = vld [vmem:[%s1407_s8 + $0xc8] ss:$12 sps:$4 sm:$0xff]   ;;  %v1005_v19 = vld [vmem:[%s1407_s8 + $0x64] ss:$12 sps:$4 sm:$0xff]  }
  0x61   : > { %241 = vadd.xlane.f32.xlu0 %v240_v10  ;;  %597 = vmatprep.subr.bf16.mxu0 %v996_v11  ;;  %v1021_v20 = vld [vmem:[%s1407_s8 + $0x8] ss:$12 sps:$4 sm:$0xff]   ;;  %v1007_v21 = vld [vmem:[%s1407_s8 + $0x60] ss:$12 sps:$4 sm:$0xff]   ;;  %v1010_v25 = vld [vmem:[%s1407_s8 + $0x78] ss:$12 sps:$4 sm:$0xff]  }
  0x62   : > { %887 = vmatprep.subr.bf16.mxu1 %v1019_v18  ;;  %v1008_v22 = vld [vmem:[%s1407_s8 + $0x7c] ss:$12 sps:$4 sm:$0xff]   ;;  %v1024_v23 = vld [vmem:[%s1407_s8 + $0xe0] ss:$12 sps:$4 sm:$0xff]   ;;  %v1029_v27 = vld [vmem:[%s1407_s8 + $0xf8] ss:$12 sps:$4 sm:$0xff]  }
  0x63   : > { %888 = vmatpush3.bf16.msra.mxu1 %v1021_v20  ;;  %v1026_v24 = vld [vmem:[%s1407_s8 + $0x20] ss:$12 sps:$4 sm:$0xff]   ;;  %v1031_v28 = vld [vmem:[%s1407_s8 + $0x38] ss:$12 sps:$4 sm:$0xff]   ;;  %v1013_v29 = vld [vmem:[%s1407_s8 + $0x90] ss:$12 sps:$4 sm:$0xff]  }
  0x64   : > { %598 = vmatpush1.bf16.msra.mxu0 %v998_v13  ;;  %889 = vmatprep.subr.bf16.mxu1 %v1024_v23  ;;  %v1011_v26 = vld [vmem:[%s1407_s8 + $0x94] ss:$12 sps:$4 sm:$0xff]   ;;  %v1034_v30 = vld [vmem:[%s1407_s8 + $0x110] ss:$12 sps:$4 sm:$0xff]   ;;  %v1014_v31 = vld [vmem:[%s1407_s8 + $0xac] ss:$12 sps:$4 sm:$0xff]  }
  0x65   : > { %244 = vadd.xlane.f32.xlu0 %v243_v12  ;;  %599 = vmatprep.subr.bf16.mxu0 %v999_v14  ;;  %v1036_v32 = vld [vmem:[%s1407_s8 + $0x50] ss:$12 sps:$4 sm:$0xff]   ;;  %v1039_v33 = vld [vmem:[%s1407_s8 + $0x128] ss:$12 sps:$4 sm:$0xff]   ;;  %v1044_v37 = vld [vmem:[%s1407_s8 + $0x140] ss:$12 sps:$4 sm:$0xff]  }
  0x66   : > { %v1016_v34 = vld [vmem:[%s1407_s8 + $0xa8] ss:$12 sps:$4 sm:$0xff]   ;;  %v1017_v36 = vld [vmem:[%s1407_s8 + $0xc4] ss:$12 sps:$4 sm:$0xff]   ;;  %v1020_v38 = vld [vmem:[%s1407_s8 + $0xc0] ss:$12 sps:$4 sm:$0xff]  }
  0x67   : > { %890 = vmatpush3.bf16.msra.mxu1 %v1026_v24  ;;  %v1041_v35 = vld [vmem:[%s1407_s8 + $0x68] ss:$12 sps:$4 sm:$0xff]   ;;  %v1046_v40 = vld [vmem:[%s1407_s8 + $0x80] ss:$12 sps:$4 sm:$0xff]   ;;  %v1049_v41 = vld [vmem:[%s1407_s8 + $0x158] ss:$12 sps:$4 sm:$0xff]  }
  0x68   : > { %600 = vmatpush1.bf16.msra.mxu0 %v1001_v15  ;;  %891 = vmatprep.subr.bf16.mxu1 %v1029_v27  ;;  %v1022_v39 = vld [vmem:[%s1407_s8 + $0xdc] ss:$12 sps:$4 sm:$0xff]   ;;  %v1025_v42 = vld [vmem:[%s1407_s8 + $0xd8] ss:$12 sps:$4 sm:$0xff]   ;;  %v1027_v44 = vld [vmem:[%s1407_s8 + $0xf4] ss:$12 sps:$4 sm:$0xff]  }
  0x69   : > { %601 = vmatprep.subr.bf16.mxu0 %v1002_v16  ;;  %v1051_v43 = vld [vmem:[%s1407_s8 + $0x98] ss:$12 sps:$4 sm:$0xff]   ;;  %v1054_v45 = vld [vmem:[%s1407_s8 + $0x170] ss:$12 sps:$4 sm:$0xff]   ;;  %v1035_v49 = vld [vmem:[%s1407_s8 + $0x108] ss:$12 sps:$4 sm:$0xff]  }
  0x6a   : > { %v1030_v46 = vld [vmem:[%s1407_s8 + $0xf0] ss:$12 sps:$4 sm:$0xff]   ;;  %v1032_v48 = vld [vmem:[%s1407_s8 + $0x10c] ss:$12 sps:$4 sm:$0xff]   ;;  %v1047_v54 = vld [vmem:[%s1407_s8 + $0x154] ss:$12 sps:$4 sm:$0xff]  }
  0x6b   : > { %892 = vmatpush3.bf16.msra.mxu1 %v1031_v28  ;;  %v1056_v47 = vld [vmem:[%s1407_s8 + $0xb0] ss:$12 sps:$4 sm:$0xff]   ;;  %v1040_v51 = vld [vmem:[%s1407_s8 + $0x120] ss:$12 sps:$4 sm:$0xff]   ;;  %v1045_v53 = vld [vmem:[%s1407_s8 + $0x138] ss:$12 sps:$4 sm:$0xff]  }
  0x6c   : > { %602 = vmatpush1.bf16.msra.mxu0 %v1004_v17  ;;  %893 = vmatprep.subr.bf16.mxu1 %v1034_v30  ;;  %v1037_v50 = vld [vmem:[%s1407_s8 + $0x124] ss:$12 sps:$4 sm:$0xff]   ;;  %v1042_v52 = vld [vmem:[%s1407_s8 + $0x13c] ss:$12 sps:$4 sm:$0xff]   ;;  %v1052_v56 = vld [vmem:[%s1407_s8 + $0x16c] ss:$12 sps:$4 sm:$0xff]  }
  0x6d   : > { %603 = vmatprep.subr.bf16.mxu0 %v1005_v19  ;;  %v1050_v55 = vld [vmem:[%s1407_s8 + $0x150] ss:$12 sps:$4 sm:$0xff]   ;;  %v1055_v57 = vld [vmem:[%s1407_s8 + $0x168] ss:$12 sps:$4 sm:$0xff]   ;;  %v260_v4 = vshrl.u32 %v259_v63, 7  ;;  %s226_s26 = scalar_lea.vmem [#allocation7], %s911_s23 }
  0x6e   : > { %v257_v9 = vld [vmem:[%s1541_s1] sm:$0x3]  ;;  %s720_s30 = sshll.u32 %s226_s26, 4  ;;  %s1214_s6 = smov [#allocation7]   ;;  %s1486_s30 = int_to_ptr.vmem [resolvable:$true] %s720_s30 }
  0x6f   : > { %894 = vmatpush3.bf16.msra.mxu1 %v1036_v32  ;;  %v261_v6 = vsub.s32 0, %v260_v4  ;;  %v265_v7 = vsub.s32 1, %v260_v4  ;;  %s1119_s22 = scalar_lea.vmem %s1486_s30, 384  ;;  %s1123_s7 = sshll.u32 %s1214_s6, 4  ;;  %s1124_s7 = int_to_ptr.vmem [resolvable:$false] %s1123_s7 }
  0x70   : > { %604 = vmatpush1.bf16.msra.mxu0 %v1007_v21  ;;  %895 = vmatprep.subr.bf16.mxu1 %v1039_v33  ;;  %p1120_p10 = scmp.ne.s32.totalorder %s1486_s30, %s1119_s22  ;;  %s1125_s10 = scalar_lea.vmem %s1124_s7, 768 }
  0x71   : > { %605 = vmatprep.subr.bf16.mxu0 %v1008_v22  ;;  %v262_v11 = vrot.slane %v257_v9, %v261_v6  ;;  %v266_v12 = vrot.slane %v257_v9, %v265_v7  ;;  %p1126_p1 = scmp.lt.s32.totalorder %s1486_s30, %s1124_s7  ;;  %p1127_p3 = scmp.lt.s32.totalorder %s1125_s10, %s1119_s22 }
  0x72   : > { %p1121_p13 = pnand %p1120_p10, %p1565_p11 }
  0x73   : > { %896 = vmatpush3.bf16.msra.mxu1 %v1041_v35  ;;  %p1128_p7 = por %p1127_p3, %p1126_p1 }
  0x74   : > { %606 = vmatpush1.bf16.msra.mxu0 %v1010_v25  ;;  %897 = vmatprep.subr.bf16.mxu1 %v1044_v37  ;;  %p1122_p5 = pneg %p1121_p13 }
  0x75   : > { %607 = vmatprep.subr.bf16.mxu0 %v1011_v26 }
  0x76   : > { %p1129_p8 = pnand %p1128_p7, %p1122_p5 }
  0x77   : > { %898 = vmatpush3.bf16.msra.mxu1 %v1046_v40 }
  0x78   : > { %608 = vmatpush1.bf16.msra.mxu0 %v1013_v29  ;;  %899 = vmatprep.subr.bf16.mxu1 %v1049_v41 }
  0x79   : > { %609 = vmatprep.subr.bf16.mxu0 %v1014_v31 }
  0x7b   : > { %900 = vmatpush3.bf16.msra.mxu1 %v1051_v43 }
  0x7c   : > { %610 = vmatpush1.bf16.msra.mxu0 %v1016_v34  ;;  %901 = vmatprep.subr.bf16.mxu1 %v1054_v45 }
  0x7d   : > { %611 = vmatprep.subr.bf16.mxu0 %v1017_v36 }
  0x7f   : > { %902 = vmatpush3.bf16.msra.mxu1 %v1056_v47 }
  0x80   : > { %612 = vmatpush1.bf16.msra.mxu0 %v1020_v38 }
  0x81   : > { %613 = vmatprep.subr.bf16.mxu0 %v1022_v39 }
  0x84   : > { %614 = vmatpush1.bf16.msra.mxu0 %v1025_v42 }
  0x85   : > { %615 = vmatprep.subr.bf16.mxu0 %v1027_v44 }
  0x88   : > { %616 = vmatpush1.bf16.msra.mxu0 %v1030_v46 }
  0x89   : > { %617 = vmatprep.subr.bf16.mxu0 %v1032_v48 }
  0x8c   : > { %618 = vmatpush1.bf16.msra.mxu0 %v1035_v49 }
  0x8d   : > { %619 = vmatprep.subr.bf16.mxu0 %v1037_v50 }
  0x90   : > { %620 = vmatpush1.bf16.msra.mxu0 %v1040_v51 }
  0x91   : > { %621 = vmatprep.subr.bf16.mxu0 %v1042_v52 }
  0x94   : > { %622 = vmatpush1.bf16.msra.mxu0 %v1045_v53 }
  0x95   : > { %623 = vmatprep.subr.bf16.mxu0 %v1047_v54 }
  0x98   : > { %624 = vmatpush1.bf16.msra.mxu0 %v1050_v55 }
  0x99   : > { %625 = vmatprep.subr.bf16.mxu0 %v1052_v56 }
  0x9c   : > { %626 = vmatpush1.bf16.msra.mxu0 %v1055_v57 }
  0xee   : > { %v242_v58 = vpop.xlane.xlu0 %241 }
  0xef   : > { %v247_v59 = vmul.f32 0.00390625, %v242_v58 }
  0xf1   : > { %v249_v60 = vadd.f32 1e-05, %v247_v59 }
  0xf2   : > { %v245_v61 = vpop.xlane.xlu0 %244 }
  0xf3   : > { %1057 = vrsqrt.f32 %v249_v60  ;;  %v248_v62 = vmul.f32 0.00390625, %v245_v61 }
  0xf5   : > { %v250_v3 = vadd.f32 1e-05, %v248_v62 }
  0xf7   : > { %1059 = vrsqrt.f32 %v250_v3 }
  0xfd   : > { %v1058_v8 = vpop.eup %1057 }
  0xfe   : > { %v254_v10 = vmul.f32 %v1058_v8, %v1415_v1  ;;  %v253_v13 = vmul.f32 %v1058_v8, %v1413_v0 }
 0x100   : > { %v270_v17 = vmul.f32 %v266_v12, %v254_v10  ;;  %v269_v19 = vmul.f32 %v262_v11, %v253_v13 }
 0x101   : > { %v1060_v14 = vpop.eup %1059 }
 0x102   : > { %v256_v15 = vmul.f32 %v1060_v14, %v1423_v5  ;;  %v255_v16 = vmul.f32 %v1060_v14, %v1417_v2 }
 0x104   : > { %v272_v18 = vmul.f32 %v266_v12, %v256_v15  ;;  %v271_v20 = vmul.f32 %v262_v11, %v255_v16 }
 0x106   : > { %v274_v21 = vpack.c.bf16 %v272_v18, %v270_v17  ;;  %v273_v22 = vpack.c.bf16 %v271_v20, %v269_v19 }
 0x108   : > { %627 = vmatprep.mubr.bf16.mxu0 %v274_v21  ;;  %670 = vmatprep.mubr.bf16.mxu1 %v274_v21 }
 0x109   : > { %628 = vmatmul.mubr.bf16.vlgmr.msra.gmra.mrb[0].mxu0 %v273_v22  ;;  %671 = vmatmul.mubr.bf16.vlgmr.msra.gmra.mrb[0].mxu1 %v273_v22 }
 0x1dc   : > { %v629_v1 = vpop.f32.mrb[0].mxu0  ;;  %v903_v23 = vpop.f32.mrb[0].mxu1 }
 0x1dd   : > { %v631_v0 = vpop.f32.mrb[1].mxu0  ;;  %v904_v5 = vpop.f32.mrb[1].mxu1 }
 0x1de   : > { %v882_v2 = vpack.c.bf16 %v631_v0, %v629_v1  ;;  %v905_v24 = vadd.f32 %v904_v5, %v903_v23  ;;  %v633_v25 = vpop.f32.mrb[2].mxu0  ;;  %v906_v26 = vpop.f32.mrb[2].mxu1 }
 0x1df   : > { %v635_v27 = vpop.f32.mrb[3].mxu0  ;;  %v907_v28 = vpop.f32.mrb[3].mxu1 }
 0x1e0   : > { %699 = vst [vmem:[%s226_s26] sm:$0xff] %v882_v2  ;;  %v883_v29 = vpack.c.bf16 %v905_v24, %v905_v24  ;;  %v884_v30 = vpack.c.bf16 %v635_v27, %v633_v25  ;;  %v908_v31 = vadd.f32 %v907_v28, %v906_v26 }
 0x1e2   : > { %700 = vst [vmem:[%s226_s26 + $0x8] sm:$0xf] %v883_v29  ;;  %701 = vst [vmem:[%s226_s26 + $0xc] sm:$0xff] %v884_v30  ;;  %v885_v32 = vpack.c.bf16 %v908_v31, %v908_v31 }
 0x1e4   : > { %702 = vst [vmem:[%s226_s26 + $0x14] sm:$0xf] %v885_v32 }
 0x1e5   : > { %1132 = shalt.err (!%p1129_p8)
}
 0x1e6   : > { %s1133_s11 = scalar_lea.hbm %s1491_s15, 384  ;;  %s1137_s20 = scalar_lea.hbm %s1543_s3, 768 }
 0x1e7   : > { %p1134_p0 = scmp.ne.s32.totalorder %s1491_s15, %s1133_s11  ;;  %p1138_p12 = scmp.lt.u32.totalorder %s1491_s15, %s1543_s3 }
 0x1e8   : > { %p1139_p2 = scmp.lt.u32.totalorder %s1137_s20, %s1133_s11  ;;  %p1141_p10 = scmp.lt.u32.totalorder %s1133_s11, %s1491_s15 }
 0x1e9   : > { %p1135_p4 = pnand %p1134_p0, %p1565_p11 }
 0x1ea   : > { %p1140_p9 = por %p1139_p2, %p1138_p12 }
 0x1eb   : > { %p1136_p6 = pneg %p1135_p4 }
 0x1ec   : > { %p1142_p13 = por %p1141_p10, %p1140_p9 }
 0x1ee   : > { %p1143_p5 = pnand %p1142_p13, %p1136_p6 }
 0x1f0   : > { %1146 = shalt.err (!%p1143_p5)
}
 0x1f1   : > { %s1215_s26 = smov 192   ;;  %s1216_s29 = smov 384  }
 0x1f2   : > { %s1217_s27 = smov 12  }
 0x1f3   : > { %918 = dma.vmem_to_hbm [thread:$0]  (%p1565_p11), %s1486_s30, 384, %s1491_s15, %s704_s28, %s1215_s26, %s1216_s29, %s1217_s27  }
 0x1f4 PF: > { %s735_s19 = sand.u32 1, %s1185_s12   ;;  %p1566_p1 = scmp.ne.s32.totalorder %s1554_s25, 0 }
 0x1f5   : > { %p1567_p3 = scmp.ge.s32.totalorder %s1205_s17, 2  ;;  %s736_s22 = scalar_lea.sflag [#allocation4], %s735_s19 }
 0x1f7   : > { %p929_p7 = pnand %p1567_p3, %p1566_p1 }
 0x1f9   : > { %1180 = dma.done.wait (!%p929_p7), %s736_s22, 384  }
 0x1fa   : > { %1182 = vsyncadd (!%p929_p7), %s736_s22, 4294966912  ;;  %s20_s17 = sadd.s32 1, %s1205_s17   ;;  %s1568_s12 = smov %s1189_s13 }
 0x1fb   : > { %p17_p8 = scmp.ge.s32.totalorder %s20_s17, 4   ;;  %s1569_s13 = smov %s1193_s14 }
 0x1fc   : > { %s1570_s14 = smov %s1364_s5  ;;  %s1571_s15 = smov %s1201_s16 }
 0x1fd   : > { %s1572_s16 = smov %s1574_s4  ;;  %19 = sbr.rel (!%p17_p8) target bundleno = 7 (0x7), region = 83 }
 0x204   :  { %741 = vsyncpa [#allocation3], 1 }
 0x205   :  { %743 = vsyncpa [#allocation3 + $0x1], 1 }
 0x206   :  { %744 = vsyncpa [#allocation6], 1 }
 0x207   :  { %746 = vsyncpa [#allocation6 + $0x1], 1 }
 0x208   :  { %747 = vsyncpa [#allocation4], 1 }
 0x209   :  { %749 = vsyncpa [#allocation4 + $0x1], 1 }

</bundles_post_ra>
